<compile_context>
chip_gen: v5e
topology: v5e:2x2
jax: 0.10.0
libtpu: 0.0.40
codegen_flags: <defaults>
</compile_context>

<pallas_src>
import functools

import jax
import jax.numpy as jnp
from jax.experimental import pallas as pl
from jax.experimental.pallas import tpu as pltpu

LANE = 128  # lane width: pad all feature dims (hidden, n_actions) into 128-wide slabs


def _round_up(x: int, m: int) -> int:
    return ((x + m - 1) // m) * m


def dqn_mlp_kernel(x_ref, w_ref, b_ref, o_ref, *, obs_dim: int):
    # x_ref: (TB, obs_dim)      one batch tile
    # w_ref: (3, LANE, LANE)    zero-padded [w1; w2; w3], resident across grid steps
    # b_ref: (3, 1, LANE)       zero-padded [b1; b2; b3], resident across grid steps
    # o_ref: (TB, LANE)         lane-dense Q-value slab (cols >= n_actions are zero)
    x = x_ref[...]                                            # (TB, obs_dim)

    w1 = w_ref[0][:obs_dim, :]                                # (obs_dim, LANE)
    h = jnp.dot(x, w1, preferred_element_type=jnp.float32)    # (TB, LANE)
    h = jnp.maximum(h + b_ref[0], 0.0)

    h = jnp.dot(h, w_ref[1], preferred_element_type=jnp.float32)
    h = jnp.maximum(h + b_ref[1], 0.0)

    q = jnp.dot(h, w_ref[2], preferred_element_type=jnp.float32) + b_ref[2]
    o_ref[...] = q.astype(o_ref.dtype)


def dqn_forward(x, params, *, batch_tile: int = 512):
    """x: (B, obs_dim) float32.  params: dict with w1,b1,w2,b2,w3,b3 (W as (in,out))."""
    w1, b1, w2, b2, w3, b3 = (params[k] for k in ("w1", "b1", "w2", "b2", "w3", "b3"))
    B, obs_dim = x.shape
    hidden = w1.shape[1]
    n_actions = w3.shape[1]
    assert obs_dim <= LANE and hidden <= LANE and n_actions <= LANE

    # Pack the 6 parameter tensors into 2 zero-padded slabs (2 DMAs instead of 6).
    w_slab = jnp.zeros((3, LANE, LANE), jnp.float32)
    w_slab = w_slab.at[0, :obs_dim, :hidden].set(w1)
    w_slab = w_slab.at[1, :hidden, :hidden].set(w2)
    w_slab = w_slab.at[2, :hidden, :n_actions].set(w3)
    b_slab = jnp.zeros((3, 1, LANE), jnp.float32)
    b_slab = b_slab.at[0, 0, :hidden].set(b1.reshape(-1))
    b_slab = b_slab.at[1, 0, :hidden].set(b2.reshape(-1))
    b_slab = b_slab.at[2, 0, :n_actions].set(b3.reshape(-1))

    # Batch tiling: TB rows per grid step (multiple of 8 for sublane alignment).
    tb = min(batch_tile, _round_up(B, 8))
    b_padded = _round_up(B, tb)
    if b_padded != B:
        x = jnp.pad(x, ((0, b_padded - B), (0, 0)))
    grid = (b_padded // tb,)

    out = pl.pallas_call(
        functools.partial(dqn_mlp_kernel, obs_dim=obs_dim),
        out_shape=jax.ShapeDtypeStruct((b_padded, LANE), jnp.float32),
        grid=grid,
        in_specs=[
            pl.BlockSpec((tb, obs_dim), lambda i: (i, 0)),          # x tile marches over batch
            pl.BlockSpec((3, LANE, LANE), lambda i: (0, 0, 0)),     # weights: VMEM-resident
            pl.BlockSpec((3, 1, LANE), lambda i: (0, 0, 0)),        # biases:  VMEM-resident
        ],
        out_specs=pl.BlockSpec((tb, LANE), lambda i: (i, 0)),       # lane-dense output slab
        compiler_params=pltpu.CompilerParams(
            dimension_semantics=("parallel",),
        ),
    )(x, w_slab, b_slab)

    return out[:B, :n_actions]


def init_params(key, obs_dim, n_actions, hidden=32):
    """Deterministic init mirroring nn.Linear shapes (stored transposed: (in, out))."""
    ks = jax.random.split(key, 6)

    def lin(kw, kb, fan_in, fan_out):
        bound = 1.0 / jnp.sqrt(fan_in)
        w = jax.random.uniform(kw, (fan_in, fan_out), jnp.float32, -bound, bound)
        b = jax.random.uniform(kb, (1, fan_out), jnp.float32, -bound, bound)
        return w, b

    w1, b1 = lin(ks[0], ks[1], obs_dim, hidden)
    w2, b2 = lin(ks[2], ks[3], hidden, hidden)
    w3, b3 = lin(ks[4], ks[5], hidden, n_actions)
    return {"w1": w1, "b1": b1, "w2": w2, "b2": b2, "w3": w3, "b3": b3}


if __name__ == "__main__":
    key = jax.random.PRNGKey(0)
    obs_dim, n_actions, batch = 4, 2, 8   # CartPole-sized DQN

    k_params, k_x = jax.random.split(key)
    params = init_params(k_params, obs_dim, n_actions)
    x = jax.random.normal(k_x, (batch, obs_dim), jnp.float32)

    out = jax.jit(dqn_forward)(x, params)
    out = jax.block_until_ready(out)

    # Sanity check against a pure-JAX reference of the same math.
    ref = x
    ref = jnp.maximum(ref @ params["w1"] + params["b1"], 0.0)
    ref = jnp.maximum(ref @ params["w2"] + params["b2"], 0.0)
    ref = ref @ params["w3"] + params["b3"]
    assert out.shape == (batch, n_actions)
    assert jnp.allclose(out, ref, atol=1e-5, rtol=1e-5)

    print("KERNEL_OK")
</pallas_src>

<mosaic_0001>
module attributes {stable_mosaic.version = 11 : i64} {
  func.func @dqn_mlp_kernel(%arg0: i32, %arg1: memref<8x4xf32, #tpu.memory_space<vmem>>, %arg2: memref<3x128x128xf32, #tpu.memory_space<vmem>>, %arg3: memref<3x1x128xf32, #tpu.memory_space<vmem>>, %arg4: memref<8x128xf32, #tpu.memory_space<vmem>>) attributes {dimension_semantics = [#tpu.dimension_semantics<parallel>], iteration_bounds = array<i64: 1>, scalar_prefetch = 0 : i64, scratch_operands = 0 : i64, tpu.core_type = #tpu.core_type<tc>, window_params = [{transform_indices = @transform_0, window_bounds = array<i64: 8, 4>}, {pipeline_mode = #tpu.pipeline_mode<synchronous>, transform_indices = @transform_1, window_bounds = array<i64: 3, 128, 128>}, {pipeline_mode = #tpu.pipeline_mode<synchronous>, transform_indices = @transform_2, window_bounds = array<i64: 3, 1, 128>}, {transform_indices = @transform_3, window_bounds = array<i64: 8, 128>}]} {
    %c0 = arith.constant 0 : index
    %c0_0 = arith.constant 0 : index
    %0 = vector.load %arg1[%c0, %c0_0] : memref<8x4xf32, #tpu.memory_space<vmem>>, vector<8x4xf32>
    %c0_1 = arith.constant 0 : index
    %c0_2 = arith.constant 0 : index
    %c0_3 = arith.constant 0 : index
    %1 = vector.load %arg2[%c0_1, %c0_2, %c0_3] : memref<3x128x128xf32, #tpu.memory_space<vmem>>, vector<1x128x128xf32>
    %2 = vector.shape_cast %1 : vector<1x128x128xf32> to vector<128x128xf32>
    %3 = vector.extract_strided_slice %2 {offsets = [0, 0], sizes = [4, 128], strides = [1, 1]} : vector<128x128xf32> to vector<4x128xf32>
    %cst = arith.constant dense<0.000000e+00> : vector<8x128xf32>
    %4 = tpu.matmul %0, %3, %cst {dimension_numbers = #tpu.dot_dimension_numbers<[1], [0], [0], [1], [0, 0, 1, 1], [], []>} : vector<8x4xf32>, vector<4x128xf32>, vector<8x128xf32> -> vector<8x128xf32>
    %c0_4 = arith.constant 0 : index
    %c0_5 = arith.constant 0 : index
    %c0_6 = arith.constant 0 : index
    %5 = vector.load %arg3[%c0_4, %c0_5, %c0_6] : memref<3x1x128xf32, #tpu.memory_space<vmem>>, vector<1x1x128xf32>
    %6 = vector.shape_cast %5 : vector<1x1x128xf32> to vector<1x128xf32>
    %7 = vector.broadcast %6 : vector<1x128xf32> to vector<8x128xf32>
    %8 = arith.addf %4, %7 : vector<8x128xf32>
    %cst_7 = arith.constant 0.000000e+00 : f32
    %9 = vector.broadcast %cst_7 : f32 to vector<8x128xf32>
    %10 = arith.maximumf %8, %9 : vector<8x128xf32>
    %c1 = arith.constant 1 : index
    %c0_8 = arith.constant 0 : index
    %c0_9 = arith.constant 0 : index
    %11 = vector.load %arg2[%c1, %c0_8, %c0_9] : memref<3x128x128xf32, #tpu.memory_space<vmem>>, vector<1x128x128xf32>
    %12 = vector.shape_cast %11 : vector<1x128x128xf32> to vector<128x128xf32>
    %cst_10 = arith.constant dense<0.000000e+00> : vector<8x128xf32>
    %13 = tpu.matmul %10, %12, %cst_10 {dimension_numbers = #tpu.dot_dimension_numbers<[1], [0], [0], [1], [0, 0, 1, 1], [], []>} : vector<8x128xf32>, vector<128x128xf32>, vector<8x128xf32> -> vector<8x128xf32>
    %c1_11 = arith.constant 1 : index
    %c0_12 = arith.constant 0 : index
    %c0_13 = arith.constant 0 : index
    %14 = vector.load %arg3[%c1_11, %c0_12, %c0_13] : memref<3x1x128xf32, #tpu.memory_space<vmem>>, vector<1x1x128xf32>
    %15 = vector.shape_cast %14 : vector<1x1x128xf32> to vector<1x128xf32>
    %16 = vector.broadcast %15 : vector<1x128xf32> to vector<8x128xf32>
    %17 = arith.addf %13, %16 : vector<8x128xf32>
    %cst_14 = arith.constant 0.000000e+00 : f32
    %18 = vector.broadcast %cst_14 : f32 to vector<8x128xf32>
    %19 = arith.maximumf %17, %18 : vector<8x128xf32>
    %c2 = arith.constant 2 : index
    %c0_15 = arith.constant 0 : index
    %c0_16 = arith.constant 0 : index
    %20 = vector.load %arg2[%c2, %c0_15, %c0_16] : memref<3x128x128xf32, #tpu.memory_space<vmem>>, vector<1x128x128xf32>
    %21 = vector.shape_cast %20 : vector<1x128x128xf32> to vector<128x128xf32>
    %cst_17 = arith.constant dense<0.000000e+00> : vector<8x128xf32>
    %22 = tpu.matmul %19, %21, %cst_17 {dimension_numbers = #tpu.dot_dimension_numbers<[1], [0], [0], [1], [0, 0, 1, 1], [], []>} : vector<8x128xf32>, vector<128x128xf32>, vector<8x128xf32> -> vector<8x128xf32>
    %c2_18 = arith.constant 2 : index
    %c0_19 = arith.constant 0 : index
    %c0_20 = arith.constant 0 : index
    %23 = vector.load %arg3[%c2_18, %c0_19, %c0_20] : memref<3x1x128xf32, #tpu.memory_space<vmem>>, vector<1x1x128xf32>
    %24 = vector.shape_cast %23 : vector<1x1x128xf32> to vector<1x128xf32>
    %25 = vector.broadcast %24 : vector<1x128xf32> to vector<8x128xf32>
    %26 = arith.addf %22, %25 : vector<8x128xf32>
    %c0_21 = arith.constant 0 : index
    %c0_22 = arith.constant 0 : index
    %27 = vector.load %arg4[%c0_21, %c0_22] : memref<8x128xf32, #tpu.memory_space<vmem>>, vector<8x128xf32>
    tpu.vector_store %arg4[%c0_21, %c0_22], %26 {strides = array<i32>} : memref<8x128xf32, #tpu.memory_space<vmem>>, vector<8x128xf32>,
    return
  }
  func.func @transform_0(%arg0: i32) -> (i32, i32) {
    %c0_i32 = arith.constant 0 : i32
    %c0_i32_0 = arith.constant 0 : i32
    return %arg0, %c0_i32 : i32, i32
  }
  func.func @transform_1(%arg0: i32) -> (i32, i32, i32) {
    %c0_i32 = arith.constant 0 : i32
    %c0_i32_0 = arith.constant 0 : i32
    %c0_i32_1 = arith.constant 0 : i32
    %c0_i32_2 = arith.constant 0 : i32
    return %c0_i32, %c0_i32_0, %c0_i32_1 : i32, i32, i32
  }
  func.func @transform_2(%arg0: i32) -> (i32, i32, i32) {
    %c0_i32 = arith.constant 0 : i32
    %c0_i32_0 = arith.constant 0 : i32
    %c0_i32_1 = arith.constant 0 : i32
    %c0_i32_2 = arith.constant 0 : i32
    return %c0_i32, %c0_i32_0, %c0_i32_1 : i32, i32, i32
  }
  func.func @transform_3(%arg0: i32) -> (i32, i32) {
    %c0_i32 = arith.constant 0 : i32
    %c0_i32_0 = arith.constant 0 : i32
    return %arg0, %c0_i32 : i32, i32
  }
}

</mosaic_0001>

<bundles_post_ra>
// kernel: dqn_forward.1
= control target key start
LH: loop header
LB: loop body
LE: loop exit
PB: predicated region body
PF: predicated region fallthrough
CT: control target
= control target key end

     0   :  { %vm24_vm0 = vcmask 1043456   ;;  %vm20_vm1 = vcmask 31744   ;;  %s312_s1 = inlined_call_operand.vmem [shape: f32[3,128,128], index: 1, kind: input, shape index: {}]   ;;  %s313_s0 = inlined_call_operand.vmem [shape: f32[8,4], index: 0, kind: input, shape index: {}]   ;;  %s314_s2 = inlined_call_operand.vmem [shape: f32[3,1,128], index: 2, kind: input, shape index: {}]   ;;  %s315_s3 = inlined_call_operand.vmem [shape: f32[8,128], index: 3, kind: output, shape index: {}]  }
   0x1   :  { %v15_v0 = vld [vmem:[%s312_s1] sm:$0xff]  ;;  %v156_v2 = vld [vmem:[%s312_s1 + $0xf8] sm:$0xff]  ;;  %v155_v3 = vld [vmem:[%s312_s1 + $0xf0] sm:$0xff] }
   0x2   :  { %v14_v1 = vld [vmem:[%s313_s0] sm:$0xff]  ;;  %139 = vmatpush.msk.msra.mxu0 %vm24_vm0, %v15_v0  ;;  %71 = vmatpush.msra.mxu1 %v156_v2  ;;  %v154_v4 = vld [vmem:[%s312_s1 + $0xe8] sm:$0xff]  ;;  %v152_v6 = vld [vmem:[%s312_s1 + $0xd8] sm:$0xff] }
   0x3   :  { %140 = vmatmul.msk.f32.vlgmr.msra.gmra.mxu0 %vm20_vm1, %v14_v1  ;;  %v153_v5 = vld [vmem:[%s312_s1 + $0xe0] sm:$0xff]  ;;  %v151_v7 = vld [vmem:[%s312_s1 + $0xd0] sm:$0xff]  ;;  %v150_v8 = vld [vmem:[%s312_s1 + $0xc8] sm:$0xff] }
   0x4   :  { %72 = vmatpush.msra.mxu1 %v155_v3  ;;  %v149_v9 = vld [vmem:[%s312_s1 + $0xc0] sm:$0xff]  ;;  %v148_v10 = vld [vmem:[%s312_s1 + $0xb8] sm:$0xff]  ;;  %v147_v11 = vld [vmem:[%s312_s1 + $0xb0] sm:$0xff] }
   0x5   :  { %v146_v12 = vld [vmem:[%s312_s1 + $0xa8] sm:$0xff]  ;;  %v145_v13 = vld [vmem:[%s312_s1 + $0xa0] sm:$0xff]  ;;  %v144_v14 = vld [vmem:[%s312_s1 + $0x98] sm:$0xff] }
   0x6   :  { %73 = vmatpush.msra.mxu1 %v154_v4  ;;  %v143_v15 = vld [vmem:[%s312_s1 + $0x90] sm:$0xff]  ;;  %v142_v16 = vld [vmem:[%s312_s1 + $0x88] sm:$0xff]  ;;  %v141_v17 = vld [vmem:[%s312_s1 + $0x80] sm:$0xff] }
   0x7   :  { %v173_v18 = vld [vmem:[%s312_s1 + $0x178] sm:$0xff]  ;;  %v172_v19 = vld [vmem:[%s312_s1 + $0x170] sm:$0xff]  ;;  %v171_v20 = vld [vmem:[%s312_s1 + $0x168] sm:$0xff] }
   0x8   :  { %74 = vmatpush.msra.mxu1 %v153_v5  ;;  %114 = vmatpush.msra.mxu2 %v173_v18  ;;  %v170_v21 = vld [vmem:[%s312_s1 + $0x160] sm:$0xff]  ;;  %v169_v22 = vld [vmem:[%s312_s1 + $0x158] sm:$0xff]  ;;  %v168_v23 = vld [vmem:[%s312_s1 + $0x150] sm:$0xff] }
   0x9   :  { %v167_v24 = vld [vmem:[%s312_s1 + $0x148] sm:$0xff]  ;;  %v166_v25 = vld [vmem:[%s312_s1 + $0x140] sm:$0xff]  ;;  %v165_v26 = vld [vmem:[%s312_s1 + $0x138] sm:$0xff] }
   0xa   :  { %75 = vmatpush.msra.mxu1 %v152_v6  ;;  %115 = vmatpush.msra.mxu2 %v172_v19  ;;  %v164_v27 = vld [vmem:[%s312_s1 + $0x130] sm:$0xff]  ;;  %v163_v28 = vld [vmem:[%s312_s1 + $0x128] sm:$0xff]  ;;  %v162_v29 = vld [vmem:[%s312_s1 + $0x120] sm:$0xff] }
   0xb   :  { %v161_v30 = vld [vmem:[%s312_s1 + $0x118] sm:$0xff]  ;;  %v175_v31 = vld [vmem:[%s314_s2] ss:$0 sm:$0xff]  ;;  %v160_v35 = vld [vmem:[%s312_s1 + $0x110] sm:$0xff] }
   0xc   :  { %76 = vmatpush.msra.mxu1 %v151_v7  ;;  %116 = vmatpush.msra.mxu2 %v171_v20  ;;  %v159_v36 = vld [vmem:[%s312_s1 + $0x108] sm:$0xff]  ;;  %v158_v37 = vld [vmem:[%s312_s1 + $0x100] sm:$0xff] }
   0xd   :  { %v176_v38 = vld [vmem:[%s314_s2 + $0x1] ss:$0 sm:$0xff]  ;;  %v177_v42 = vld [vmem:[%s314_s2 + $0x2] ss:$0 sm:$0xff] }
   0xe   :  { %77 = vmatpush.msra.mxu1 %v150_v8  ;;  %117 = vmatpush.msra.mxu2 %v170_v21 }
  0x10   :  { %78 = vmatpush.msra.mxu1 %v149_v9  ;;  %118 = vmatpush.msra.mxu2 %v169_v22 }
  0x12   :  { %79 = vmatpush.msra.mxu1 %v148_v10  ;;  %119 = vmatpush.msra.mxu2 %v168_v23 }
  0x14   :  { %80 = vmatpush.msra.mxu1 %v147_v11  ;;  %120 = vmatpush.msra.mxu2 %v167_v24 }
  0x16   :  { %81 = vmatpush.msra.mxu1 %v146_v12  ;;  %121 = vmatpush.msra.mxu2 %v166_v25 }
  0x18   :  { %82 = vmatpush.msra.mxu1 %v145_v13  ;;  %122 = vmatpush.msra.mxu2 %v165_v26 }
  0x1a   :  { %83 = vmatpush.msra.mxu1 %v144_v14  ;;  %123 = vmatpush.msra.mxu2 %v164_v27 }
  0x1c   :  { %84 = vmatpush.msra.mxu1 %v143_v15  ;;  %124 = vmatpush.msra.mxu2 %v163_v28 }
  0x1e   :  { %85 = vmatpush.msra.mxu1 %v142_v16  ;;  %125 = vmatpush.msra.mxu2 %v162_v29 }
  0x20   :  { %86 = vmatpush.msra.mxu1 %v141_v17  ;;  %126 = vmatpush.msra.mxu2 %v161_v30 }
  0x22   :  { %127 = vmatpush.msra.mxu2 %v160_v35 }
  0x24   :  { %128 = vmatpush.msra.mxu2 %v159_v36 }
  0x26   :  { %129 = vmatpush.msra.mxu2 %v158_v37 }
  0x80   :  { %v45_v32 = vpop.f32.mrf.mxu0 }
  0x81   :  { %v46_v33 = vadd.f32 %v175_v31, %v45_v32 }
  0x83   :  { %v48_v34 = vmax.f32 %v46_v33, 0.0 }
  0x85   :  { %87 = vmatmul.f32.vlgmr.msra.gmra.mxu1 %v48_v34 }
 0x102   :  { %v88_v39 = vpop.f32.mrf.mxu1 }
 0x103   :  { %v89_v40 = vadd.f32 %v176_v38, %v88_v39 }
 0x105   :  { %v91_v41 = vmax.f32 %v89_v40, 0.0 }
 0x107   :  { %130 = vmatmul.f32.vlgmr.msra.gmra.mxu2 %v91_v41 }
 0x18a   :  { %v131_v43 = vpop.f32.mrf.mxu2 }
 0x18b   :  { %v132_v44 = vadd.f32 %v177_v42, %v131_v43 }
 0x18d   :  { %134 = vst [vmem:[%s315_s3] sm:$0xff] %v132_v44 }

</bundles_post_ra>
